<compile_context>
chip_gen: v7x
topology: tpu7x:2x2x1
jax: 0.10.0
libtpu: 0.0.40
codegen_flags: <defaults>
</compile_context>

<pallas_src>
import jax
import jax.numpy as jnp
import numpy as np
from jax.experimental import pallas as pl
from jax.experimental.pallas import tpu as pltpu


def _cdiv(a, b):
    return -(-a // b)


def _student_attn_kernel(lens_ref,     # [bt, 1, 1] int32  valid tweet counts
                         emb_ref,      # [bt, T, H] bf16   per-tweet embeddings
                         wa_ref,       # [1, 1, H]  bf16   attn_ff weight (row)
                         wc_ref,       # [2, 1, H]  f32    classifier weight rows
                         bc_ref,       # [1, 1, 2]  f32    classifier bias
                         logits_ref,   # out [bt, 1, 2] f32
                         scores_ref):  # out [bt, 1, T] f32
    bt, t, h = emb_ref.shape
    x = emb_ref[...]                                         # [bt, T, H] bf16

    # Attention logits on the MXU (bf16 operands, f32 accumulation):
    #   s[b, 0, t] = sum_h wa[h] * x[b, t, h]
    wa_b = jnp.broadcast_to(wa_ref[...], (bt, 1, h))         # [bt, 1, H] bf16
    s = jnp.einsum('bqh,bth->bqt', wa_b, x,
                   preferred_element_type=jnp.float32)       # [bt, 1, T] f32
    # attn_ff bias omitted: softmax(s + c) == softmax(s) (shift invariance).

    # Masked softmax over each user's len_real valid tweets (all in f32).
    lens = lens_ref[...]                                     # [bt, 1, 1] int32
    t_idx = jax.lax.broadcasted_iota(jnp.int32, (bt, 1, t), 2)
    valid = t_idx < lens                                     # [bt, 1, T]
    s = jnp.where(valid, s, jnp.float32(-1e30))
    m = jnp.max(s, axis=-1, keepdims=True)
    e = jnp.where(valid, jnp.exp(s - m), jnp.float32(0.0))
    denom = jnp.maximum(jnp.sum(e, axis=-1, keepdims=True), jnp.float32(1e-30))
    scores = e / denom                                       # zeros on padding
    scores_ref[...] = scores

    # Attention pooling on the MXU: pooled[b,0,:] = sum_t scores[b,t] * x[b,t,:]
    pooled = jnp.einsum('bqt,bth->bqh', scores.astype(jnp.bfloat16), x,
                        preferred_element_type=jnp.float32)  # [bt, 1, H] f32

    # Classifier: logits[:, :, c] = <pooled, wc[:, c]> + bc[c]  (lane-dense
    # multiply + lane reduce; avoids any lane-sparse [*, *, 2] intermediate).
    wc = wc_ref[...]                                         # [2, 1, H] f32
    bc = bc_ref[...]                                         # [1, 1, 2] f32
    l0 = jnp.sum(pooled * wc[0:1], axis=-1, keepdims=True)   # [bt, 1, 1]
    l1 = jnp.sum(pooled * wc[1:2], axis=-1, keepdims=True)   # [bt, 1, 1]
    logits_ref[:, :, 0:1] = l0 + bc[:, :, 0:1]
    logits_ref[:, :, 1:2] = l1 + bc[:, :, 1:2]


def _pick_tile_and_vmem(B, T, H):
    """Users-per-step tile and vmem limit from the chip's VMEM capacity."""
    vmem_cap = 64 << 20                     # conservative default (v7x per-TC)
    try:
        vmem_cap = int(getattr(pltpu.get_tpu_info(), "vmem_capacity_bytes",
                               vmem_cap))
    except Exception:
        pass
    vreg = 4096
    # Dominant per-user VMEM cost of one grid step (bytes):
    #   emb block (bf16, double-buffered)                       : 2 * 2*T*H
    #   (1, H)-shaped vreg-padded temps (wa bcast, pooled, cls product)
    #   (1, T)-shaped f32 softmax temps
    per_user = (4 * T * H
                + 3 * vreg * _cdiv(H, 128)
                + 6 * vreg * _cdiv(max(T, 1), 128))
    budget = max(4 << 20, min(int(0.35 * vmem_cap), 48 << 20))
    bt = max(1, min(budget // per_user, 512))
    bt = min(bt, max(1, _cdiv(B, 2)))   # >= 2 grid steps -> both v7x TCs busy
    vmem_limit = int(max(32 << 20, min(int(0.75 * vmem_cap), 96 << 20)))
    return int(bt), vmem_limit


def student_attn_forward(emb_student, len_real, params, max_length_tweet):
    """emb_student: [B, T, H] (bf16 preferred), len_real: [B] int,
    params: (wa [H,1], ba [1,1], wc [H,2], bc [1,2])."""
    B, T, H = emb_student.shape
    if T > max_length_tweet:
        raise ValueError("max_length_tweet must be >= tweet slots T")
    wa, ba, wc, bc = params
    del ba  # softmax shift invariance: attn_ff bias cannot change the outputs

    # No T/H padding, no padded copy: the bf16 tensor goes straight to the
    # kernel (cast only if the producer handed us a wider dtype).
    x = (emb_student if emb_student.dtype == jnp.bfloat16
         else emb_student.astype(jnp.bfloat16))
    lens3 = jnp.clip(len_real.astype(jnp.int32), 0, T).reshape(B, 1, 1)
    wa3 = wa.reshape(1, 1, H).astype(jnp.bfloat16)
    wc3 = wc.T.reshape(2, 1, H).astype(jnp.float32)
    bc3 = bc.reshape(1, 1, 2).astype(jnp.float32)

    bt, vmem_limit = _pick_tile_and_vmem(B, T, H)
    grid = (_cdiv(B, bt),)  # last block may be partial; OOB rows are dropped

    grid_spec = pltpu.PrefetchScalarGridSpec(
        num_scalar_prefetch=0,
        grid=grid,
        in_specs=[
            pl.BlockSpec((bt, 1, 1), lambda i: (i, 0, 0)),   # lengths
            pl.BlockSpec((bt, T, H), lambda i: (i, 0, 0)),   # embeddings (bf16)
            pl.BlockSpec((1, 1, H), lambda i: (0, 0, 0)),    # attn weight
            pl.BlockSpec((2, 1, H), lambda i: (0, 0, 0)),    # classifier weight
            pl.BlockSpec((1, 1, 2), lambda i: (0, 0, 0)),    # classifier bias
        ],
        out_specs=[
            pl.BlockSpec((bt, 1, 2), lambda i: (i, 0, 0)),   # logits
            pl.BlockSpec((bt, 1, T), lambda i: (i, 0, 0)),   # scores
        ],
    )

    logits3, scores3 = pl.pallas_call(
        _student_attn_kernel,
        grid_spec=grid_spec,
        out_shape=(
            jax.ShapeDtypeStruct((B, 1, 2), jnp.float32),
            jax.ShapeDtypeStruct((B, 1, T), jnp.float32),
        ),
        compiler_params=pltpu.CompilerParams(
            dimension_semantics=("parallel",),   # users are independent
            vmem_limit_bytes=vmem_limit),
    )(lens3, x, wa3, wc3, bc3)

    logits = logits3[:, 0, :]                  # [B, 2]
    scores = scores3[:, 0, :]                  # [B, T]
    if T < max_length_tweet:                   # module pads scores with zeros
        scores = jnp.pad(scores, ((0, 0), (0, max_length_tweet - T)))
    return {"logits": logits, "scores_attn": scores}


def _reference_forward(emb_student, len_real, params, max_length_tweet):
    """Pure-JAX per-user loop mirroring the PyTorch forward semantics (f32)."""
    wa, ba, wc, bc = params
    B = emb_student.shape[0]
    logits_all, scores_all = [], []
    for b in range(B):
        L = int(len_real[b])
        xb = emb_student[b, :L].astype(jnp.float32)      # [L, H]
        s = (xb @ wa)[:, 0] + ba[0, 0]                   # attn_ff(...).squeeze(-1)
        sc = jax.nn.softmax(s, axis=-1)                  # [L]
        emb_user = sc @ xb                               # [H]
        logit = emb_user @ wc + bc[0]                    # [2]
        pad = jnp.zeros((max_length_tweet - L,), jnp.float32)
        logits_all.append(logit)
        scores_all.append(jnp.concatenate([sc, pad]))
    return jnp.stack(logits_all), jnp.stack(scores_all)


if __name__ == "__main__":
    B, T, H = 2, 8, 32          # users, tweet slots per user, hidden_dim
    MAX_LENGTH_TWEET = 16       # config.max_length_tweet

    key = jax.random.PRNGKey(0)
    k_emb, k_wa, k_ba, k_wc, k_bc = jax.random.split(key, 5)

    # Synthetic per-tweet embeddings (stand-in for encoder + user_encoder
    # output), kept in bf16 so the kernel's HBM read is half-width.
    emb_student = jax.random.normal(
        k_emb, (B, T, H), jnp.float32).astype(jnp.bfloat16)
    len_real = jnp.array([8, 5], dtype=jnp.int32)

    wa = jax.random.normal(k_wa, (H, 1), jnp.float32) * 0.1   # attn_ff: Linear(H, 1)
    ba = jax.random.normal(k_ba, (1, 1), jnp.float32) * 0.1
    wc = jax.random.normal(k_wc, (H, 2), jnp.float32) * 0.1   # classifier: Linear(H, 2)
    bc = jax.random.normal(k_bc, (1, 2), jnp.float32) * 0.1
    params = (wa, ba, wc, bc)

    out = student_attn_forward(emb_student, len_real, params, MAX_LENGTH_TWEET)
    jax.block_until_ready(out["logits"])
    jax.block_until_ready(out["scores_attn"])

    # Reference: f32 math on the same bf16-rounded embeddings / attn weight.
    # The kernel's only extra rounding is the bf16 cast of the softmax scores
    # fed to the pooling matmul (f32 accumulation) -> ~1e-3 level logit diffs.
    ref_params = (wa.astype(jnp.bfloat16).astype(jnp.float32), ba, wc, bc)
    ref_logits, ref_scores = _reference_forward(
        emb_student.astype(jnp.float32), len_real, ref_params, MAX_LENGTH_TWEET)

    np.testing.assert_allclose(np.asarray(out["scores_attn"]),
                               np.asarray(ref_scores), atol=2e-5, rtol=1e-3)
    np.testing.assert_allclose(np.asarray(out["logits"]),
                               np.asarray(ref_logits), atol=3e-2, rtol=3e-2)

    print("KERNEL_OK")
</pallas_src>

<mosaic_0001>
module attributes {stable_mosaic.version = 11 : i64} {
  func.func @_student_attn_kernel(%arg0: i32, %arg1: memref<1x1x1xi32, #tpu.memory_space<vmem>>, %arg2: memref<1x8x32xbf16, #tpu.memory_space<vmem>>, %arg3: memref<1x1x32xbf16, #tpu.memory_space<vmem>>, %arg4: memref<2x1x32xf32, #tpu.memory_space<vmem>>, %arg5: memref<1x1x2xf32, #tpu.memory_space<vmem>>, %arg6: memref<1x1x2xf32, #tpu.memory_space<vmem>>, %arg7: memref<1x1x8xf32, #tpu.memory_space<vmem>>) attributes {dimension_semantics = [#tpu.dimension_semantics<parallel>], iteration_bounds = array<i64: 2>, scalar_prefetch = 0 : i64, scratch_operands = 0 : i64, tpu.core_type = #tpu.core_type<tc>, window_params = [{transform_indices = @transform_0, window_bounds = array<i64: 1, 1, 1>}, {transform_indices = @transform_1, window_bounds = array<i64: 1, 8, 32>}, {pipeline_mode = #tpu.pipeline_mode<synchronous>, transform_indices = @transform_2, window_bounds = array<i64: 1, 1, 32>}, {pipeline_mode = #tpu.pipeline_mode<synchronous>, transform_indices = @transform_3, window_bounds = array<i64: 2, 1, 32>}, {pipeline_mode = #tpu.pipeline_mode<synchronous>, transform_indices = @transform_4, window_bounds = array<i64: 1, 1, 2>}, {transform_indices = @transform_5, window_bounds = array<i64: 1, 1, 2>}, {transform_indices = @transform_6, window_bounds = array<i64: 1, 1, 8>}]} {
    %c0 = arith.constant 0 : index
    %c0_0 = arith.constant 0 : index
    %c0_1 = arith.constant 0 : index
    %0 = vector.load %arg2[%c0, %c0_0, %c0_1] : memref<1x8x32xbf16, #tpu.memory_space<vmem>>, vector<1x8x32xbf16>
    %c0_2 = arith.constant 0 : index
    %c0_3 = arith.constant 0 : index
    %c0_4 = arith.constant 0 : index
    %1 = vector.load %arg3[%c0_2, %c0_3, %c0_4] : memref<1x1x32xbf16, #tpu.memory_space<vmem>>, vector<1x1x32xbf16>
    "tpu.trace_start"() <{level = 10 : i32, message = "bqh,bth->bqt"}> : () -> ()
    %cst = arith.constant dense<0.000000e+00> : vector<1x1x8xf32>
    %2 = tpu.matmul %1, %0, %cst {dimension_numbers = #tpu.dot_dimension_numbers<[2], [2], [1], [1], [0, 0, 0, 1, 1, 1], [0], [0]>} : vector<1x1x32xbf16>, vector<1x8x32xbf16>, vector<1x1x8xf32> -> vector<1x1x8xf32>
    "tpu.trace_stop"() : () -> ()
    %c0_5 = arith.constant 0 : index
    %c0_6 = arith.constant 0 : index
    %c0_7 = arith.constant 0 : index
    %3 = vector.load %arg1[%c0_5, %c0_6, %c0_7] : memref<1x1x1xi32, #tpu.memory_space<vmem>>, vector<1x1x1xi32>
    %4 = tpu.iota {dimensions = array<i32: 2>} : vector<1x1x8xi32>
    %5 = vector.broadcast %3 : vector<1x1x1xi32> to vector<1x1x8xi32>
    %6 = arith.cmpi slt, %4, %5 : vector<1x1x8xi32>
    %cst_8 = arith.constant -1.000000e+30 : f32
    %7 = vector.broadcast %cst_8 : f32 to vector<1x1x8xf32>
    %8 = arith.select %6, %2, %7 : vector<1x1x8xi1>, vector<1x1x8xf32>
    %cst_9 = arith.constant dense<0xFF800000> : vector<1x1xf32>
    %9 = vector.multi_reduction <maximumf>, %8, %cst_9 [2] : vector<1x1x8xf32> to vector<1x1xf32>
    %10 = vector.shape_cast %9 : vector<1x1xf32> to vector<1x1x1xf32>
    %11 = vector.broadcast %10 : vector<1x1x1xf32> to vector<1x1x8xf32>
    %12 = arith.subf %8, %11 : vector<1x1x8xf32>
    %13 = math.exp %12 : vector<1x1x8xf32>
    %cst_10 = arith.constant 0.000000e+00 : f32
    %14 = vector.broadcast %cst_10 : f32 to vector<1x1x8xf32>
    %15 = arith.select %6, %13, %14 : vector<1x1x8xi1>, vector<1x1x8xf32>
    %cst_11 = arith.constant dense<0.000000e+00> : vector<1x1xf32>
    %16 = vector.multi_reduction <add>, %15, %cst_11 [2] : vector<1x1x8xf32> to vector<1x1xf32>
    %17 = vector.shape_cast %16 : vector<1x1xf32> to vector<1x1x1xf32>
    %cst_12 = arith.constant 1.000000e-30 : f32
    %18 = vector.broadcast %cst_12 : f32 to vector<1x1x1xf32>
    %19 = arith.maximumf %17, %18 : vector<1x1x1xf32>
    %20 = vector.broadcast %19 : vector<1x1x1xf32> to vector<1x1x8xf32>
    %21 = arith.divf %15, %20 : vector<1x1x8xf32>
    %c0_13 = arith.constant 0 : index
    %c0_14 = arith.constant 0 : index
    %c0_15 = arith.constant 0 : index
    %22 = vector.load %arg7[%c0_13, %c0_14, %c0_15] : memref<1x1x8xf32, #tpu.memory_space<vmem>>, vector<1x1x8xf32>
    tpu.vector_store %arg7[%c0_13, %c0_14, %c0_15], %21 {strides = array<i32>} : memref<1x1x8xf32, #tpu.memory_space<vmem>>, vector<1x1x8xf32>,
    %23 = arith.truncf %21 : vector<1x1x8xf32> to vector<1x1x8xbf16>
    "tpu.trace_start"() <{level = 10 : i32, message = "bqt,bth->bqh"}> : () -> ()
    %cst_16 = arith.constant dense<0.000000e+00> : vector<1x1x32xf32>
    %24 = tpu.matmul %23, %0, %cst_16 {dimension_numbers = #tpu.dot_dimension_numbers<[2], [1], [1], [2], [0, 0, 0, 1, 1, 2], [0], [0]>} : vector<1x1x8xbf16>, vector<1x8x32xbf16>, vector<1x1x32xf32> -> vector<1x1x32xf32>
    "tpu.trace_stop"() : () -> ()
    %c0_17 = arith.constant 0 : index
    %c0_18 = arith.constant 0 : index
    %c0_19 = arith.constant 0 : index
    %25 = vector.load %arg4[%c0_17, %c0_18, %c0_19] : memref<2x1x32xf32, #tpu.memory_space<vmem>>, vector<2x1x32xf32>
    %c0_20 = arith.constant 0 : index
    %c0_21 = arith.constant 0 : index
    %c0_22 = arith.constant 0 : index
    %26 = vector.load %arg5[%c0_20, %c0_21, %c0_22] : memref<1x1x2xf32, #tpu.memory_space<vmem>>, vector<1x1x2xf32>
    %27 = vector.extract_strided_slice %25 {offsets = [0, 0, 0], sizes = [1, 1, 32], strides = [1, 1, 1]} : vector<2x1x32xf32> to vector<1x1x32xf32>
    %28 = arith.mulf %24, %27 : vector<1x1x32xf32>
    %cst_23 = arith.constant dense<0.000000e+00> : vector<1x1xf32>
    %29 = vector.multi_reduction <add>, %28, %cst_23 [2] : vector<1x1x32xf32> to vector<1x1xf32>
    %30 = vector.shape_cast %29 : vector<1x1xf32> to vector<1x1x1xf32>
    %31 = vector.extract_strided_slice %25 {offsets = [1, 0, 0], sizes = [1, 1, 32], strides = [1, 1, 1]} : vector<2x1x32xf32> to vector<1x1x32xf32>
    %32 = arith.mulf %24, %31 : vector<1x1x32xf32>
    %cst_24 = arith.constant dense<0.000000e+00> : vector<1x1xf32>
    %33 = vector.multi_reduction <add>, %32, %cst_24 [2] : vector<1x1x32xf32> to vector<1x1xf32>
    %34 = vector.shape_cast %33 : vector<1x1xf32> to vector<1x1x1xf32>
    %35 = vector.extract_strided_slice %26 {offsets = [0, 0, 0], sizes = [1, 1, 1], strides = [1, 1, 1]} : vector<1x1x2xf32> to vector<1x1x1xf32>
    %36 = arith.addf %30, %35 : vector<1x1x1xf32>
    %c0_25 = arith.constant 0 : index
    %c0_26 = arith.constant 0 : index
    %c0_27 = arith.constant 0 : index
    %37 = vector.load %arg6[%c0_25, %c0_26, %c0_27] : memref<1x1x2xf32, #tpu.memory_space<vmem>>, vector<1x1x1xf32>
    tpu.vector_store %arg6[%c0_25, %c0_26, %c0_27], %36 {strides = array<i32>} : memref<1x1x2xf32, #tpu.memory_space<vmem>>, vector<1x1x1xf32>,
    %38 = vector.extract_strided_slice %26 {offsets = [0, 0, 1], sizes = [1, 1, 1], strides = [1, 1, 1]} : vector<1x1x2xf32> to vector<1x1x1xf32>
    %39 = arith.addf %34, %38 : vector<1x1x1xf32>
    %c0_28 = arith.constant 0 : index
    %c0_29 = arith.constant 0 : index
    %c1 = arith.constant 1 : index
    %40 = vector.load %arg6[%c0_28, %c0_29, %c1] : memref<1x1x2xf32, #tpu.memory_space<vmem>>, vector<1x1x1xf32>
    tpu.vector_store %arg6[%c0_28, %c0_29, %c1], %39 {strides = array<i32>} : memref<1x1x2xf32, #tpu.memory_space<vmem>>, vector<1x1x1xf32>,
    return
  }
  func.func @transform_0(%arg0: i32) -> (i32, i32, i32) {
    %c0_i32 = arith.constant 0 : i32
    %c0_i32_0 = arith.constant 0 : i32
    %c0_i32_1 = arith.constant 0 : i32
    return %arg0, %c0_i32, %c0_i32_0 : i32, i32, i32
  }
  func.func @transform_1(%arg0: i32) -> (i32, i32, i32) {
    %c0_i32 = arith.constant 0 : i32
    %c0_i32_0 = arith.constant 0 : i32
    %c0_i32_1 = arith.constant 0 : i32
    return %arg0, %c0_i32, %c0_i32_0 : i32, i32, i32
  }
  func.func @transform_2(%arg0: i32) -> (i32, i32, i32) {
    %c0_i32 = arith.constant 0 : i32
    %c0_i32_0 = arith.constant 0 : i32
    %c0_i32_1 = arith.constant 0 : i32
    %c0_i32_2 = arith.constant 0 : i32
    return %c0_i32, %c0_i32_0, %c0_i32_1 : i32, i32, i32
  }
  func.func @transform_3(%arg0: i32) -> (i32, i32, i32) {
    %c0_i32 = arith.constant 0 : i32
    %c0_i32_0 = arith.constant 0 : i32
    %c0_i32_1 = arith.constant 0 : i32
    %c0_i32_2 = arith.constant 0 : i32
    return %c0_i32, %c0_i32_0, %c0_i32_1 : i32, i32, i32
  }
  func.func @transform_4(%arg0: i32) -> (i32, i32, i32) {
    %c0_i32 = arith.constant 0 : i32
    %c0_i32_0 = arith.constant 0 : i32
    %c0_i32_1 = arith.constant 0 : i32
    %c0_i32_2 = arith.constant 0 : i32
    return %c0_i32, %c0_i32_0, %c0_i32_1 : i32, i32, i32
  }
  func.func @transform_5(%arg0: i32) -> (i32, i32, i32) {
    %c0_i32 = arith.constant 0 : i32
    %c0_i32_0 = arith.constant 0 : i32
    %c0_i32_1 = arith.constant 0 : i32
    return %arg0, %c0_i32, %c0_i32_0 : i32, i32, i32
  }
  func.func @transform_6(%arg0: i32) -> (i32, i32, i32) {
    %c0_i32 = arith.constant 0 : i32
    %c0_i32_0 = arith.constant 0 : i32
    %c0_i32_1 = arith.constant 0 : i32
    return %arg0, %c0_i32, %c0_i32_0 : i32, i32, i32
  }
}

</mosaic_0001>

<bundles_post_ra>
// kernel: tpu_custom_call.1
= control target key start
LH: loop header
LB: loop body
LE: loop exit
PB: predicated region body
PF: predicated region fallthrough
CT: control target
= control target key end

     0   :  { %12 = vsyncpa [#allocation3], 0  ;;  %s1051_s0 = inlined_call_operand.vmem [shape: s32[2,1,1], index: 0, kind: input, shape index: {}]   ;;  %s1052_s1 = inlined_call_operand.hbm [shape: bf16[2,8,32], index: 1, kind: input, shape index: {}]   ;;  %s1053_s2 = inlined_call_operand.vmem [shape: bf16[1,1,32], index: 2, kind: input, shape index: {}]   ;;  %s1054_s3 = inlined_call_operand.vmem [shape: f32[2,1,32], index: 3, kind: input, shape index: {}]   ;;  %s1055_s4 = inlined_call_operand.vmem [shape: f32[1,1,2], index: 4, kind: input, shape index: {}]   ;;  %s1056_s5 = inlined_call_operand.hbm [shape: f32[2,1,2], index: 5, kind: output, shape index: {0}]   ;;  %s1057_s6 = inlined_call_operand.hbm [shape: f32[2,1,8], index: 6, kind: output, shape index: {1}]  }
   0x1   :  { %14 = vsyncpa [#allocation3 + $0x1], 0 }
   0x2   :  { %15 = vsyncpa [#allocation4], 0 }
   0x3   :  { %17 = vsyncpa [#allocation4 + $0x1], 0 }
   0x4   :  { %18 = vsyncpa [#allocation7], 0 }
   0x5   :  { %20 = vsyncpa [#allocation7 + $0x1], 0  ;;  %s841_s21 = smov 0   ;;  %s843_s22 = smov 0  }
   0x6   :  { %s845_s23 = smov 0   ;;  %s847_s24 = smov 0  }
   0x7 LB: > { %s862_s25 = sadd.s32 4294967295, %s796_s24   ;;  %s578_s26 = sadd.s32 4294967294, %s796_s24   ;;  %s796_s24 = sphi %s847_s24, %s1072_s24   ;;  %s792_s23 = sphi %s845_s23, %s1071_s23   ;;  %s788_s22 = sphi %s843_s22, %s1070_s22   ;;  %s784_s21 = sphi %s841_s21, %s1069_s21  }
   0x8   : > { %s866_s27 = sadd.s32 1, %s796_s24   ;;  %s59_s28 = sadd.s32 1, %s792_s23 }
   0x9   : > { %s56_s29 = ssub.s32 %s796_s24, %s866_s27  ;;  %p66_p0 = scmp.ne.s32.totalorder %s792_s23, %s788_s22 }
   0xa   : > { %p57_p1 = scmp.eq.s32.totalorder %s56_s29, 0  ;;  %p67_p2 = scmp.eq.s32.totalorder %s796_s24, 0 }
   0xb   : > { %p72_p3 = scmp.ne.s32.totalorder %s788_s22, %s784_s21  ;;  %p73_p4 = scmp.eq.s32.totalorder %s862_s25, 0 }
   0xc   : > { %s878_s30 = scalar_select %p57_p1, %s792_s23, %s59_s28  }
   0xd   : > { %p880_p5 = por %p67_p2, %p66_p0  ;;  %p884_p6 = por %p73_p4, %p72_p3 }
   0xe   : > { %p159_p7 = scmp.eq.s32.totalorder %s862_s25, 1  ;;  %p165_p8 = scmp.eq.s32.totalorder %s578_s26, 1 }
   0xf   : > { %p624_p10 = scmp.lt.s32.totalorder %s796_s24, 2  ;;  %s226_s11 = sand.u32 1, %s792_s23  }
  0x10   : > { %p891_p11 = por %p159_p7, %p66_p0  ;;  %p895_p12 = por %p165_p8, %p72_p3 }
  0x11   : > { %s582_s12 = sshll.u32 %s796_s24, 6  ;;  %s581_s13 = sshll.u32 %s226_s11, 2 }
  0x12   : > { %s1061_s9 = scalar_select %p891_p11, 1, 0 }
  0x13   : > { %s1062_s10 = scalar_select %p895_p12, 1, 0 }
  0x14   : > { %s904_s16 = scalar_lea.hbm %s1052_s1, %s582_s12  ;;  %s230_s17 = scalar_lea.vmem [#allocation2], %s581_s13 }
  0x15   : > { %s237_s18 = sshll.u32 %s230_s17, 4  ;;  %p908_p13 = pnand %p624_p10, %p880_p5  ;;  %s912_s18 = int_to_ptr.vmem [resolvable:$true] %s237_s18 }
  0x16   : > { %s227_s20 = scalar_lea.sflag [#allocation3], %s226_s11  ;;  %s668_s26 = scalar_lea.hbm %s904_s16, 64 }
  0x17   : > { %p669_p2 = scmp.ne.s32.totalorder %s904_s16, %s668_s26  ;;  %p670_p3 = pneg %p908_p13 }
  0x18   : > { %s673_s7 = scalar_lea.hbm %s1052_s1, 128  ;;  %p674_p5 = scmp.lt.u32.totalorder %s904_s16, %s1052_s1 }
  0x19   : > { %p671_p4 = pnand %p670_p3, %p669_p2  ;;  %p675_p8 = scmp.lt.u32.totalorder %s673_s7, %s668_s26 }
  0x1a   : > { %p677_p9 = scmp.lt.u32.totalorder %s668_s26, %s904_s16 }
  0x1b   : > { %p672_p7 = pneg %p671_p4  ;;  %p676_p10 = por %p675_p8, %p674_p5 }
  0x1d   : > { %p678_p0 = por %p677_p9, %p676_p10 }
  0x1f   : > { %p679_p1 = pnand %p678_p0, %p672_p7 }
  0x21   : > { %682 = shalt.err (!%p679_p1)
}
  0x22   : > { %s683_s11 = scalar_lea.vmem %s912_s18, 64  ;;  %s798_s14 = smov [#allocation2]  }
  0x23   : > { %p684_p2 = scmp.ne.s32.totalorder %s912_s18, %s683_s11  ;;  %s688_s15 = sshll.u32 %s798_s14, 4  ;;  %s689_s15 = int_to_ptr.vmem [resolvable:$false] %s688_s15 }
  0x24   : > { %s690_s17 = scalar_lea.vmem %s689_s15, 128  ;;  %p691_p11 = scmp.lt.s32.totalorder %s912_s18, %s689_s15 }
  0x25   : > { %p686_p4 = pnand %p684_p2, %p670_p3  ;;  %p692_p5 = scmp.lt.s32.totalorder %s690_s17, %s683_s11 }
  0x27   : > { %p687_p12 = pneg %p686_p4  ;;  %p693_p8 = por %p692_p5, %p691_p11 }
  0x29   : > { %p694_p9 = pnand %p693_p8, %p687_p12 }
  0x2b   : > { %697 = shalt.err (!%p694_p9)
}
  0x2c   : > { %616 = dma.hbm_to_vmem [thread:$0]  (!%p908_p13), %s904_s16, 64, %s912_s18, %s227_s20  }
  0x2d   : > { %p1064_p0 = scmp.lt.s32.totalorder %s796_s24, 3  ;;  %p1065_p1 = scmp.ge.s32.totalorder %s796_s24, 1 }
  0x2f   : > { %p243_p3 = pnand %p1065_p1, %p1064_p0 }
  0x30   : > { %s946_s26 = sand.u32 (!%p243_p3), 1, %s788_s22  }
  0x31   : > { %246 = sbr.rel (%p243_p3) target bundleno = 1091 (0x443), region = 40  ;;  %s584_s28 = sshll.u32 (!%p243_p3), %s946_s26, 2 }
  0x32   : > { %s249_s29 = scalar_lea.sflag (!%p243_p3), [#allocation3], %s946_s26  ;;  %s252_s7 = scalar_lea.vmem (!%p243_p3), [#allocation2], %s584_s28 }
  0x38   : > { %771 = dma.done.wait (%p884_p6), %s249_s29, 64  }
  0x39   : > { %773 = vsyncadd (%p884_p6), %s249_s29, 4294967232  ;;  %p287_p11 = scmp.lt.s32.totalorder %s862_s25, 1  ;;  %v799_v0 = vmov 0.0   ;;  %vm800_vm0 = vmmov 0   ;;  %v801_v1 = vmov 0   ;;  %vm293_vm1 = vcmask 261120  }
  0x3a   : > { %595 = vmatprep.subr.bf16.mxu0 %v799_v0  ;;  %597 = vmatprep.mubr.msk.bf16.mxu0 %vm800_vm0, %v799_v0  ;;  %v291_v2 = vld [vmem:[%s252_s7] sm:$0xf]  ;;  %v292_v5 = vld [vmem:[%s1053_s2] sm:$0x1]  ;;  %v341_v6 = vlaneseq  ;;  %vm352_vm3 = vcmask 57344   ;;  %vm372_vm4 = vcmask 1043456  }
  0x3b   : > { %663 = vset.pattern.permute.xlu0 %v801_v1  ;;  %s288_s16 = scalar_select %p287_p11, %s862_s25, 1  ;;  %601 = vmatprep.subr.bf16.mxu1 %v799_v0  ;;  %v298_v4 = vsel %vm293_vm1, %v291_v2, 0  ;;  %v373_v24 = vsel %vm372_vm4, %v291_v2, 0  ;;  %vm368_vm5 = vcmask 64512   ;;  %v416_v30 = vld [vmem:[%s1054_s3 + $0x1] sm:$0x1] }
  0x3c   : > { %603 = vmatprep.mubr.msk.bf16.mxu1 %vm800_vm0, %v799_v0  ;;  %596 = vmatpush3.bf16.xpose.msra.mxu0 %v298_v4  ;;  %v347_v7 = vshrl.u32 %v341_v6, 7  ;;  %v342_v11 = vand.u32 127, %v341_v6  ;;  %s286_s13 = scalar_lea.vmem [#allocation6], %s946_s26  ;;  %vm419_vm6 = vcmask 253952   ;;  %v417_v37 = vld [vmem:[%s1055_s4] sm:$0x1] }
  0x3d   : > { %s289_s20 = scalar_lea.vmem %s1051_s0, %s288_s16  ;;  %602 = vmatpush3.bf16.msra.mxu1 %v373_v24  ;;  %s802_s28 = smov 127   ;;  %v415_v39 = vld [vmem:[%s1054_s3] sm:$0x1] }
  0x3e   : > { %v340_v3 = vld [vmem:[%s289_s20] sm:$0x1]  ;;  %v348_v8 = vsub.s32 0, %v347_v7  ;;  %s587_s16 = sshll.u32 %s862_s25, 4  ;;  %s475_s8 = sshll.u32 %s286_s13, 4  ;;  %s476_s8 = int_to_ptr.vmem [resolvable:$true] %s475_s8 }
  0x3f   : > { %344 = vperm.xlu0 %663, %v340_v3   ;;  %s981_s20 = scalar_lea.hbm %s1057_s6, %s587_s16  ;;  %s450_s12 = scalar_lea.sflag [#allocation7], %s946_s26 }
  0x40   : > { %v434_v38 = vrot.slane %v417_v37, %v348_v8  ;;  %s698_s11 = scalar_lea.vmem %s476_s8, 16  ;;  %p1066_p12 = scmp.ne.s32.totalorder %s1061_s9, 0 }
  0x41   : > { %p699_p6 = scmp.ne.s32.totalorder %s476_s8, %s698_s11  ;;  %s803_s14 = smov [#allocation6]  }
  0x42   : > { %s702_s15 = sshll.u32 %s803_s14, 4  ;;  %s703_s15 = int_to_ptr.vmem [resolvable:$false] %s702_s15 }
  0x43   : > { %598 = vmatmul.mubr.msk.bf16.vlgmr.msra.gmra.mrb[0].mxu0 %vm293_vm1, %v292_v5  ;;  %p700_p13 = pnand %p699_p6, %p1066_p12  ;;  %s704_s17 = scalar_lea.vmem %s703_s15, 32 }
  0x44   : > { %p705_p10 = scmp.lt.s32.totalorder %s476_s8, %s703_s15  ;;  %p706_p2 = scmp.lt.s32.totalorder %s704_s17, %s698_s11 }
  0x45   : > { %p701_p7 = pneg %p700_p13 }
  0x46   : > { %p707_p4 = por %p706_p2, %p705_p10 }
  0x48   : > { %p708_p5 = pnand %p707_p4, %p701_p7 }
  0xbe   : > { %v345_v9 = vpop.permute.xlu0 %344 }
  0xbf   : > { %v349_v10 = vrot.slane %v345_v9, %v348_v8 }
  0xc1   : > { %vm350_vm2 = vcmp.lt.s32.totalorder %v342_v11, %v349_v10 }
 0x116   : > { %v334_v12 = vpop.f32.mrb[0].mxu0 }
 0x117   : > { %v351_v13 = vsel %vm350_vm2, %v334_v12, -1e+30  ;;  %v599_v14 = vpop.f32.mrb[1].mxu0 }
 0x118   : > { %v337_v15 = vpop.f32.mrb[2].mxu0  ;;  %v353_v16 = vsel %vm352_vm3, %v351_v13, -inf }
 0x119   : > { %354 = vmax.xlane.f32.xlu0 %v353_v16  ;;  %v600_v17 = vpop.f32.mrb[3].mxu0 }
 0x1a6   : > { %v355_v18 = vpop.xlane.xlu0 %354 }
 0x1a7   : > { %v356_v19 = vsub.f32 %v351_v13, %v355_v18 }
 0x1a9   : > { %v357_v20 = vmul.f32 1.442695, %v356_v19 }
 0x1ab   : > { %664 = vpow2.f32 %v357_v20 }
 0x1b5   : > { %v665_v21 = vpop.eup %664 }
 0x1b6   : > { %v359_v22 = vsel %vm350_vm2, %v665_v21, 0.0 }
 0x1b7   : > { %v360_v23 = vsel %vm352_vm3, %v359_v22, 0.0 }
 0x1b8   : > { %361 = vadd.xlane.f32.xlu1 %v360_v23 }
 0x245   : > { %v362_v25 = vpop.xlane.xlu1 %361 }
 0x246   : > { %v363_v26 = vmax.f32 %v362_v25, 1e-30 }
 0x248   : > { %666 = vrcp.f32 %v363_v26 }
 0x252   : > { %v667_v27 = vpop.eup %666 }
 0x253   : > { %v365_v28 = vmul.f32 %v667_v27, %v359_v22 }
 0x255   : > { %v367_v29 = vpack.c.bf16 %v365_v28, %v365_v28  ;;  %366 = vst.msk [vmem:[%s286_s13] sm:$0x1] %vm352_vm3, %v365_v28 }
 0x257   : > { %604 = vmatmul.mubr.msk.bf16.vlgmr.msra.gmra.mrb[0].mxu1 %vm368_vm5, %v367_v29 }
 0x32a   : > { %v409_v31 = vpop.f32.mrb[0].mxu1 }
 0x32b   : > { %v423_v32 = vmul.f32 %v416_v30, %v409_v31  ;;  %v605_v33 = vpop.f32.mrb[1].mxu1  ;;  %v418_v40 = vmul.f32 %v415_v39, %v409_v31 }
 0x32c   : > { %v412_v34 = vpop.f32.mrb[2].mxu1 }
 0x32d   : > { %v606_v35 = vpop.f32.mrb[3].mxu1  ;;  %v424_v36 = vsel %vm419_vm6, %v423_v32, 0.0  ;;  %v420_v41 = vsel %vm419_vm6, %v418_v40, 0.0 }
 0x32e   : > { %425 = vadd.xlane.f32.xlu1 %v424_v36 }
 0x33f   : > { %435 = vrot.lane.b32.xlu1 %v434_v38, %s802_s28 }
 0x363   : > { %421 = vadd.xlane.f32.xlu1 %v420_v41 }
 0x364   : > { %711 = shalt.err (!%p708_p5)
}
 0x365   : > { %s712_s13 = scalar_lea.hbm %s981_s20, 16  ;;  %s716_s7 = scalar_lea.hbm %s1057_s6, 32 }
 0x366   : > { %p713_p8 = scmp.ne.s32.totalorder %s981_s20, %s712_s13  ;;  %p717_p1 = scmp.lt.u32.totalorder %s981_s20, %s1057_s6 }
 0x367   : > { %p718_p3 = scmp.lt.u32.totalorder %s716_s7, %s712_s13  ;;  %p720_p6 = scmp.lt.u32.totalorder %s712_s13, %s981_s20 }
 0x368   : > { %p714_p9 = pnand %p713_p8, %p1066_p12 }
 0x369   : > { %p719_p11 = por %p718_p3, %p717_p1 }
 0x36a   : > { %p715_p0 = pneg %p714_p9 }
 0x36b   : > { %p721_p13 = por %p720_p6, %p719_p11 }
 0x36d   : > { %p722_p7 = pnand %p721_p13, %p715_p0 }
 0x36f   : > { %725 = shalt.err (!%p722_p7)
}
 0x370   : > { %610 = dma.vmem_to_hbm [thread:$0]  (%p1066_p12), %s476_s8, 16, %s981_s20, %s450_s12   ;;  %vm428_vm7 = vcmask 0   ;;  %vm443_vm8 = vcmask 8200  }
 0x371   : > { %s804_s11 = smov 1   ;;  %s280_s14 = scalar_lea.vmem [#allocation5], %s946_s26 }
 0x372   : > { %s462_s15 = sshll.u32 %s280_s14, 4  ;;  %s1007_s28 = scalar_lea.hbm %s1056_s5, %s587_s16  ;;  %s1009_s15 = int_to_ptr.vmem [resolvable:$true] %s462_s15 }
 0x373   : > { %s446_s20 = scalar_lea.sflag [#allocation4], %s946_s26  ;;  %s726_s8 = scalar_lea.vmem %s1009_s15, 16 }
 0x374   : > { %p727_p10 = scmp.ne.s32.totalorder %s1009_s15, %s726_s8  ;;  %s805_s12 = smov [#allocation5]  }
 0x375   : > { %s730_s25 = sshll.u32 %s805_s12, 4  ;;  %s731_s25 = int_to_ptr.vmem [resolvable:$false] %s730_s25 }
 0x376   : > { %p728_p2 = pnand %p727_p10, %p1066_p12  ;;  %s732_s29 = scalar_lea.vmem %s731_s25, 32 }
 0x377   : > { %p733_p5 = scmp.lt.s32.totalorder %s1009_s15, %s731_s25  ;;  %p734_p8 = scmp.lt.s32.totalorder %s732_s29, %s726_s8 }
 0x378   : > { %p729_p4 = pneg %p728_p2 }
 0x379   : > { %p735_p9 = por %p734_p8, %p733_p5 }
 0x37b   : > { %p736_p0 = pnand %p735_p9, %p729_p4 }
 0x3bb   : > { %v426_v42 = vpop.xlane.xlu1 %425 }
 0x3bf   : > { %v436_v43 = vpop.permute.xlu1 %435 }
 0x3c0   : > { %v438_v44 = vadd.f32 %v436_v43, %v426_v42 }
 0x3c2   : > { %440 = vrot.lane.b32.xlu0 %v438_v44, %s804_s11 }
 0x3f0   : > { %v422_v45 = vpop.xlane.xlu1 %421 }
 0x3f1   : > { %v427_v46 = vadd.f32 %v422_v45, %v417_v37 }
 0x3f3   : > { %429 = vst.msk [vmem:[%s280_s14] sm:$0x1] %vm428_vm7, %v427_v46 }
 0x434   : > { %v441_v47 = vpop.permute.xlu0 %440 }
 0x435   : > { %444 = vst.msk [vmem:[%s280_s14] sm:$0x1] %vm443_vm8, %v441_v47 }
 0x436   : > { %739 = shalt.err (!%p736_p0)
}
 0x437   : > { %s740_s26 = scalar_lea.hbm %s1007_s28, 16  ;;  %s744_s18 = scalar_lea.hbm %s1056_s5, 32 }
 0x438   : > { %p741_p1 = scmp.ne.s32.totalorder %s1007_s28, %s740_s26  ;;  %p745_p6 = scmp.lt.u32.totalorder %s1007_s28, %s1056_s5 }
 0x439   : > { %p746_p13 = scmp.lt.u32.totalorder %s744_s18, %s740_s26  ;;  %p748_p10 = scmp.lt.u32.totalorder %s740_s26, %s1007_s28 }
 0x43a   : > { %p742_p3 = pnand %p741_p1, %p1066_p12 }
 0x43b   : > { %p747_p7 = por %p746_p13, %p745_p6 }
 0x43c   : > { %p743_p11 = pneg %p742_p3 }
 0x43d   : > { %p749_p2 = por %p748_p10, %p747_p7 }
 0x43f   : > { %p750_p4 = pnand %p749_p2, %p743_p11 }
 0x441   : > { %753 = shalt.err (!%p750_p4)
}
 0x442   : > { %609 = dma.vmem_to_hbm [thread:$0]  (%p1066_p12), %s1009_s15, 16, %s1007_s28, %s446_s20  }
 0x443 PF: > { %s487_s14 = sand.u32 1, %s784_s21   ;;  %p1067_p5 = scmp.ne.s32.totalorder %s1062_s10, 0 }
 0x444   : > { %p1068_p8 = scmp.ge.s32.totalorder %s796_s24, 2  ;;  %s488_s17 = scalar_lea.sflag [#allocation4], %s487_s14 }
 0x446   : > { %p618_p9 = pnand %p1068_p8, %p1067_p5 }
 0x448   : > { %775 = dma.done.wait (!%p618_p9), %s488_s17, 16  }
 0x449   : > { %777 = vsyncadd (!%p618_p9), %s488_s17, 4294967280  ;;  %s496_s13 = scalar_lea.sflag [#allocation7], %s487_s14 }
 0x44a   : > { %779 = dma.done.wait (!%p618_p9), %s496_s13, 16  }
 0x44b   : > { %781 = vsyncadd (!%p618_p9), %s496_s13, 4294967280  ;;  %p23_p12 = scmp.ge.s32.totalorder %s866_s27, 4   ;;  %s1069_s21 = smov %s788_s22 }
 0x44c   : > { %s1070_s22 = smov %s792_s23  ;;  %s1071_s23 = smov %s878_s30 }
 0x44d   : > { %s1072_s24 = smov %s866_s27  ;;  %25 = sbr.rel (!%p23_p12) target bundleno = 7 (0x7), region = 105 }
 0x454   :  { %500 = vsyncpa [#allocation3], 1 }
 0x455   :  { %502 = vsyncpa [#allocation3 + $0x1], 1 }
 0x456   :  { %503 = vsyncpa [#allocation4], 1 }
 0x457   :  { %505 = vsyncpa [#allocation4 + $0x1], 1 }
 0x458   :  { %506 = vsyncpa [#allocation7], 1 }
 0x459   :  { %508 = vsyncpa [#allocation7 + $0x1], 1 }

</bundles_post_ra>
